<compile_context>
chip_gen: v7x
topology: tpu7x:2x2x1
jax: 0.10.0
libtpu: 0.0.40
codegen_flags: <defaults>
</compile_context>

<pallas_src>
import functools

import jax
import jax.numpy as jnp
from jax.experimental import pallas as pl
from jax.experimental.pallas import tpu as pltpu


def self_attention_kernel(x_ref, mask_ref, wd_ref, bd_ref, ws_ref, bs_ref,
                          out_ref):
    """One grid step processes TB batch elements.

    x_ref    : (TB, S, H)  f32 input block
    mask_ref : (TB, S)     f32 token mask (1.0 = keep, 0.0 = masked)
    wd_ref   : (H, H)      bf16 dense weight (in, out)
    bd_ref   : (1, H)      f32 dense bias
    ws_ref   : (1, H)      f32 attention-scorer weight (stored as a row)
    bs_ref   : (1, 1)      f32 attention-scorer bias
    out_ref  : (TB, H)     f32 pooled output block
    """
    tb, s, h = x_ref.shape

    x = x_ref[...]                                    # (TB, S, H) f32
    x2 = x.reshape(tb * s, h)                         # collapse leading dims

    # Dense H->H: (TB*S, H) @ (H, H) on the MXU, bf16 operands, f32 accumulate.
    hpre = jnp.dot(x2.astype(jnp.bfloat16), wd_ref[...],
                   preferred_element_type=jnp.float32)
    u = jnp.tanh(hpre + bd_ref[...])                  # (TB*S, H) f32, tanh->EUP

    # Attention scorer H->1: broadcast-multiply + lane reduction (VPU/XLU),
    # producing a lane-dense (TB, S) score tensor directly.
    u3 = u.reshape(tb, s, h)
    ws = ws_ref[...].reshape(1, 1, h)
    u_w = jnp.sum(u3 * ws, axis=-1) + bs_ref[...]     # (TB, S)

    # Masked softmax along S (the lane axis).  Masked terms are zeroed after
    # the exp instead of being set to -inf, so fully-masked rows produce exact
    # zeros (equivalent to torch's NaN->0 scrub) with no extra where/isnan
    # passes.  The finite max shift keeps the math identical for valid rows.
    mask = mask_ref[...]                              # (TB, S) f32
    m = jnp.max(u_w, axis=-1, keepdims=True)          # (TB, 1)
    e = jnp.exp(u_w - m) * mask                       # (TB, S)
    denom = jnp.maximum(jnp.sum(e, axis=-1, keepdims=True), 1e-30)
    # pl.reciprocal(denom, approx=True) would push this to the EUP slot; exact
    # divide is kept so the tight reference check below passes.
    att = e / denom                                   # (TB, S)

    # pooled[b] = sum_s att[b, s] * x[b, s, :]   (the bmm in the module).
    # S and H are small here, so a VPU broadcast-multiply + sublane reduction
    # is cheap; for large S*H this would be routed through the MXU instead.
    pooled = jnp.sum(att[:, :, None] * x, axis=1)     # (TB, H)
    out_ref[...] = pooled.astype(out_ref.dtype)


@functools.partial(jax.jit, static_argnames=("tb",))
def self_attention_forward(x, token_mask, w_dense, b_dense, w_score, b_score,
                           *, tb=8):
    """x: (B, S, H), token_mask: (B, S) -> (B, H)."""
    B, S, H = x.shape
    n_blocks = pl.cdiv(B, tb)
    Bp = n_blocks * tb

    xf = x.astype(jnp.float32)
    maskf = token_mask.astype(jnp.float32)
    if Bp != B:   # pad batch to a multiple of the batch tile; padded rows are masked
        xf = jnp.pad(xf, ((0, Bp - B), (0, 0), (0, 0)))
        maskf = jnp.pad(maskf, ((0, Bp - B), (0, 0)))

    wd_bf16 = w_dense.astype(jnp.bfloat16)            # matmul-only operand
    bd2 = b_dense.reshape(1, H).astype(jnp.float32)
    ws_row = w_score.reshape(1, H).astype(jnp.float32)
    bs2 = b_score.reshape(1, 1).astype(jnp.float32)

    out = pl.pallas_call(
        self_attention_kernel,
        out_shape=jax.ShapeDtypeStruct((Bp, H), jnp.float32),
        grid_spec=pltpu.PrefetchScalarGridSpec(
            num_scalar_prefetch=0,
            grid=(n_blocks,),
            in_specs=[
                pl.BlockSpec((tb, S, H), lambda b: (b, 0, 0)),   # x
                pl.BlockSpec((tb, S), lambda b: (b, 0)),         # mask
                pl.BlockSpec((H, H), lambda b: (0, 0)),          # dense W (bf16)
                pl.BlockSpec((1, H), lambda b: (0, 0)),          # dense b
                pl.BlockSpec((1, H), lambda b: (0, 0)),          # scorer W row
                pl.BlockSpec((1, 1), lambda b: (0, 0)),          # scorer b
            ],
            out_specs=pl.BlockSpec((tb, H), lambda b: (b, 0)),
        ),
        compiler_params=pltpu.CompilerParams(
            dimension_semantics=("parallel",)),
    )(xf, maskf, wd_bf16, bd2, ws_row, bs2)
    return out[:B]


def reference_forward(x, token_mask, w_dense, b_dense, w_score, b_score):
    """Pure-JAX reference with torch semantics (incl. -inf / NaN->0 path).

    The dense matmul uses the same bf16-operand / f32-accumulate precision as
    the kernel so the comparison isolates kernel correctness from the
    (intentional) mixed-precision choice.
    """
    att_s = jnp.einsum('bsh,hk->bsk', x.astype(jnp.bfloat16),
                       w_dense.astype(jnp.bfloat16),
                       preferred_element_type=jnp.float32) + b_dense
    u_i = jnp.tanh(att_s)
    u_w = jnp.einsum('bsh,hk->bsk', u_i, w_score)[..., 0] + b_score[0]
    u_w = jnp.where(token_mask > 0.5, u_w, -jnp.inf)
    m = jnp.max(u_w, axis=-1, keepdims=True)
    e = jnp.exp(u_w - m)
    att = e / jnp.sum(e, axis=-1, keepdims=True)
    att = jnp.where(jnp.isnan(att), 0.0, att)
    return jnp.einsum('bs,bsh->bh', att, x)


if __name__ == "__main__":
    B, S, H = 16, 8, 32
    TB = 8

    key = jax.random.PRNGKey(0)
    kx, kwd, kbd, kws, kbs = jax.random.split(key, 5)

    x = jax.random.normal(kx, (B, S, H), dtype=jnp.float32)

    # token mask: mostly valid, batch 1 has its last 3 tokens masked,
    # batch 3 is fully masked (exercises the softmax NaN->0 equivalence).
    token_mask = jnp.ones((B, S), dtype=jnp.float32)
    token_mask = token_mask.at[1, 5:].set(0.0)
    token_mask = token_mask.at[3, :].set(0.0)

    # deterministic nn.Linear-style init: uniform(-k, k), k = 1/sqrt(fan_in)
    k_lin = 1.0 / jnp.sqrt(jnp.float32(H))
    w_dense = jax.random.uniform(kwd, (H, H), jnp.float32, -k_lin, k_lin)
    b_dense = jax.random.uniform(kbd, (H,), jnp.float32, -k_lin, k_lin)
    w_score = jax.random.uniform(kws, (H, 1), jnp.float32, -k_lin, k_lin)
    b_score = jax.random.uniform(kbs, (1,), jnp.float32, -k_lin, k_lin)

    out = self_attention_forward(x, token_mask, w_dense, b_dense,
                                 w_score, b_score, tb=TB)
    out = jax.block_until_ready(out)

    ref = reference_forward(x, token_mask, w_dense, b_dense, w_score, b_score)
    assert out.shape == (B, H)
    assert jnp.allclose(out, ref, rtol=1e-3, atol=1e-3), "mismatch vs reference"

    print("KERNEL_OK")
</pallas_src>

<mosaic_0001>
module attributes {stable_mosaic.version = 11 : i64} {
  func.func @self_attention_kernel(%arg0: i32, %arg1: memref<8x8x32xf32, #tpu.memory_space<vmem>>, %arg2: memref<8x8xf32, #tpu.memory_space<vmem>>, %arg3: memref<32x32xbf16, #tpu.memory_space<vmem>>, %arg4: memref<1x32xf32, #tpu.memory_space<vmem>>, %arg5: memref<1x32xf32, #tpu.memory_space<vmem>>, %arg6: memref<1x1xf32, #tpu.memory_space<vmem>>, %arg7: memref<8x32xf32, #tpu.memory_space<vmem>>) attributes {dimension_semantics = [#tpu.dimension_semantics<parallel>], iteration_bounds = array<i64: 2>, scalar_prefetch = 0 : i64, scratch_operands = 0 : i64, tpu.core_type = #tpu.core_type<tc>, window_params = [{transform_indices = @transform_0, window_bounds = array<i64: 8, 8, 32>}, {transform_indices = @transform_1, window_bounds = array<i64: 8, 8>}, {pipeline_mode = #tpu.pipeline_mode<synchronous>, transform_indices = @transform_2, window_bounds = array<i64: 32, 32>}, {pipeline_mode = #tpu.pipeline_mode<synchronous>, transform_indices = @transform_3, window_bounds = array<i64: 1, 32>}, {pipeline_mode = #tpu.pipeline_mode<synchronous>, transform_indices = @transform_4, window_bounds = array<i64: 1, 32>}, {pipeline_mode = #tpu.pipeline_mode<synchronous>, transform_indices = @transform_5, window_bounds = array<i64: 1, 1>}, {transform_indices = @transform_6, window_bounds = array<i64: 8, 32>}]} {
    %c0 = arith.constant 0 : index
    %c0_0 = arith.constant 0 : index
    %c0_1 = arith.constant 0 : index
    %0 = vector.load %arg1[%c0, %c0_0, %c0_1] : memref<8x8x32xf32, #tpu.memory_space<vmem>>, vector<8x8x32xf32>
    %1 = vector.shape_cast %0 : vector<8x8x32xf32> to vector<64x32xf32>
    %2 = arith.truncf %1 : vector<64x32xf32> to vector<64x32xbf16>
    %c0_2 = arith.constant 0 : index
    %c0_3 = arith.constant 0 : index
    %3 = vector.load %arg3[%c0_2, %c0_3] : memref<32x32xbf16, #tpu.memory_space<vmem>>, vector<32x32xbf16>
    %cst = arith.constant dense<0.000000e+00> : vector<64x32xf32>
    %4 = tpu.matmul %2, %3, %cst {dimension_numbers = #tpu.dot_dimension_numbers<[1], [0], [0], [1], [0, 0, 1, 1], [], []>} : vector<64x32xbf16>, vector<32x32xbf16>, vector<64x32xf32> -> vector<64x32xf32>
    %c0_4 = arith.constant 0 : index
    %c0_5 = arith.constant 0 : index
    %5 = vector.load %arg4[%c0_4, %c0_5] : memref<1x32xf32, #tpu.memory_space<vmem>>, vector<1x32xf32>
    %6 = vector.broadcast %5 : vector<1x32xf32> to vector<64x32xf32>
    %7 = arith.addf %4, %6 : vector<64x32xf32>
    %8 = math.tanh %7 : vector<64x32xf32>
    %9 = vector.shape_cast %8 : vector<64x32xf32> to vector<8x8x32xf32>
    %c0_6 = arith.constant 0 : index
    %c0_7 = arith.constant 0 : index
    %10 = vector.load %arg5[%c0_6, %c0_7] : memref<1x32xf32, #tpu.memory_space<vmem>>, vector<1x32xf32>
    %11 = vector.shape_cast %10 : vector<1x32xf32> to vector<1x1x32xf32>
    %12 = vector.broadcast %11 : vector<1x1x32xf32> to vector<8x8x32xf32>
    %13 = arith.mulf %9, %12 : vector<8x8x32xf32>
    %cst_8 = arith.constant dense<0.000000e+00> : vector<8x8xf32>
    %14 = vector.multi_reduction <add>, %13, %cst_8 [2] : vector<8x8x32xf32> to vector<8x8xf32>
    %c0_9 = arith.constant 0 : index
    %c0_10 = arith.constant 0 : index
    %15 = vector.load %arg6[%c0_9, %c0_10] : memref<1x1xf32, #tpu.memory_space<vmem>>, vector<1x1xf32>
    %16 = vector.broadcast %15 : vector<1x1xf32> to vector<8x8xf32>
    %17 = arith.addf %14, %16 : vector<8x8xf32>
    %c0_11 = arith.constant 0 : index
    %c0_12 = arith.constant 0 : index
    %18 = vector.load %arg2[%c0_11, %c0_12] : memref<8x8xf32, #tpu.memory_space<vmem>>, vector<8x8xf32>
    %cst_13 = arith.constant dense<0xFF800000> : vector<8xf32>
    %19 = vector.multi_reduction <maximumf>, %17, %cst_13 [1] : vector<8x8xf32> to vector<8xf32>
    %20 = vector.shape_cast %19 : vector<8xf32> to vector<8x1xf32>
    %21 = vector.broadcast %20 : vector<8x1xf32> to vector<8x8xf32>
    %22 = arith.subf %17, %21 : vector<8x8xf32>
    %23 = math.exp %22 : vector<8x8xf32>
    %24 = arith.mulf %23, %18 : vector<8x8xf32>
    %cst_14 = arith.constant dense<0.000000e+00> : vector<8xf32>
    %25 = vector.multi_reduction <add>, %24, %cst_14 [1] : vector<8x8xf32> to vector<8xf32>
    %26 = vector.shape_cast %25 : vector<8xf32> to vector<8x1xf32>
    %cst_15 = arith.constant 1.000000e-30 : f32
    %27 = vector.broadcast %cst_15 : f32 to vector<8x1xf32>
    %28 = arith.maximumf %26, %27 : vector<8x1xf32>
    %29 = vector.broadcast %28 : vector<8x1xf32> to vector<8x8xf32>
    %30 = arith.divf %24, %29 : vector<8x8xf32>
    %31 = vector.shape_cast %30 : vector<8x8xf32> to vector<8x8x1xf32>
    %32 = vector.broadcast %31 : vector<8x8x1xf32> to vector<8x8x32xf32>
    %33 = arith.mulf %32, %0 : vector<8x8x32xf32>
    %cst_16 = arith.constant dense<0.000000e+00> : vector<8x32xf32>
    %34 = vector.multi_reduction <add>, %33, %cst_16 [1] : vector<8x8x32xf32> to vector<8x32xf32>
    %c0_17 = arith.constant 0 : index
    %c0_18 = arith.constant 0 : index
    %35 = vector.load %arg7[%c0_17, %c0_18] : memref<8x32xf32, #tpu.memory_space<vmem>>, vector<8x32xf32>
    tpu.vector_store %arg7[%c0_17, %c0_18], %34 {strides = array<i32>} : memref<8x32xf32, #tpu.memory_space<vmem>>, vector<8x32xf32>,
    return
  }
  func.func @transform_0(%arg0: i32) -> (i32, i32, i32) {
    %c0_i32 = arith.constant 0 : i32
    %c0_i32_0 = arith.constant 0 : i32
    %c0_i32_1 = arith.constant 0 : i32
    return %arg0, %c0_i32, %c0_i32_0 : i32, i32, i32
  }
  func.func @transform_1(%arg0: i32) -> (i32, i32) {
    %c0_i32 = arith.constant 0 : i32
    %c0_i32_0 = arith.constant 0 : i32
    return %arg0, %c0_i32 : i32, i32
  }
  func.func @transform_2(%arg0: i32) -> (i32, i32) {
    %c0_i32 = arith.constant 0 : i32
    %c0_i32_0 = arith.constant 0 : i32
    %c0_i32_1 = arith.constant 0 : i32
    return %c0_i32, %c0_i32_0 : i32, i32
  }
  func.func @transform_3(%arg0: i32) -> (i32, i32) {
    %c0_i32 = arith.constant 0 : i32
    %c0_i32_0 = arith.constant 0 : i32
    %c0_i32_1 = arith.constant 0 : i32
    return %c0_i32, %c0_i32_0 : i32, i32
  }
  func.func @transform_4(%arg0: i32) -> (i32, i32) {
    %c0_i32 = arith.constant 0 : i32
    %c0_i32_0 = arith.constant 0 : i32
    %c0_i32_1 = arith.constant 0 : i32
    return %c0_i32, %c0_i32_0 : i32, i32
  }
  func.func @transform_5(%arg0: i32) -> (i32, i32) {
    %c0_i32 = arith.constant 0 : i32
    %c0_i32_0 = arith.constant 0 : i32
    %c0_i32_1 = arith.constant 0 : i32
    return %c0_i32, %c0_i32_0 : i32, i32
  }
  func.func @transform_6(%arg0: i32) -> (i32, i32) {
    %c0_i32 = arith.constant 0 : i32
    %c0_i32_0 = arith.constant 0 : i32
    return %arg0, %c0_i32 : i32, i32
  }
}

</mosaic_0001>

<bundles_post_ra>
// kernel: self_attention_forward.1
= control target key start
LH: loop header
LB: loop body
LE: loop exit
PB: predicated region body
PF: predicated region fallthrough
CT: control target
= control target key end

     0   :  { %s1668_s0 = inlined_call_operand.hbm [shape: f32[16,8,32], index: 0, kind: input, shape index: {}]   ;;  %s1669_s1 = inlined_call_operand.vmem [shape: f32[16,8], index: 1, kind: input, shape index: {}]   ;;  %s1670_s2 = inlined_call_operand.vmem [shape: bf16[32,32], index: 2, kind: input, shape index: {}]   ;;  %s1671_s3 = inlined_call_operand.vmem [shape: f32[1,32], index: 3, kind: input, shape index: {}]   ;;  %s1672_s4 = inlined_call_operand.vmem [shape: f32[1,32], index: 4, kind: input, shape index: {}]   ;;  %s1673_s5 = inlined_call_operand.<no memory space> [shape: f32[1,1], index: 5, kind: input, shape index: {}]   ;;  %s1674_s6 = inlined_call_operand.hbm [shape: f32[16,32], index: 6, kind: output, shape index: {}]  }
   0x1   :  { %v11_v0 = vstv %s1673_s5 }
   0x2   :  { %12 = vst [vmem:[#allocation2] sm:$0x1] %v11_v0 }
   0x3   :  { %13 = vsyncpa [#allocation4], 0 }
   0x4   :  { %15 = vsyncpa [#allocation4 + $0x1], 0 }
   0x5   :  { %16 = vsyncpa [#allocation5], 0 }
   0x6   :  { %18 = vsyncpa [#allocation5 + $0x1], 0  ;;  %s1307_s23 = smov 0   ;;  %s1309_s24 = smov 0  }
   0x7   :  { %s1311_s25 = smov 0   ;;  %s1313_s26 = smov 0  }
   0x8 LB: > { %s1328_s5 = sadd.s32 4294967295, %s1262_s26   ;;  %s1019_s27 = sadd.s32 4294967294, %s1262_s26   ;;  %s1262_s26 = sphi %s1313_s26, %s1687_s26   ;;  %s1258_s25 = sphi %s1311_s25, %s1686_s25   ;;  %s1254_s24 = sphi %s1309_s24, %s1685_s24   ;;  %s1250_s23 = sphi %s1307_s23, %s1684_s23  }
   0x9   : > { %s1332_s28 = sadd.s32 1, %s1262_s26   ;;  %s31_s29 = sadd.s32 1, %s1258_s25 }
   0xa   : > { %s28_s30 = ssub.s32 %s1262_s26, %s1332_s28  ;;  %p38_p0 = scmp.ne.s32.totalorder %s1258_s25, %s1254_s24 }
   0xb   : > { %p29_p1 = scmp.eq.s32.totalorder %s28_s30, 0  ;;  %p39_p2 = scmp.eq.s32.totalorder %s1262_s26, 0 }
   0xc   : > { %p44_p3 = scmp.ne.s32.totalorder %s1254_s24, %s1250_s23  ;;  %p45_p4 = scmp.eq.s32.totalorder %s1328_s5, 0 }
   0xd   : > { %s1344_s7 = scalar_select %p29_p1, %s1258_s25, %s31_s29  }
   0xe   : > { %p1346_p5 = por %p39_p2, %p38_p0  ;;  %p1350_p6 = por %p45_p4, %p44_p3 }
   0xf   : > { %p178_p7 = scmp.eq.s32.totalorder %s1328_s5, 1  ;;  %p184_p8 = scmp.eq.s32.totalorder %s1019_s27, 1 }
  0x10   : > { %p1077_p10 = scmp.lt.s32.totalorder %s1262_s26, 2  ;;  %s216_s12 = sand.u32 1, %s1258_s25  }
  0x11   : > { %p1357_p11 = por %p178_p7, %p38_p0  ;;  %p1361_p12 = por %p184_p8, %p44_p3 }
  0x12   : > { %s1042_s13 = sshll.u32 %s1262_s26, 10  ;;  %s1022_s14 = sshll.u32 %s216_s12, 6 }
  0x13   : > { %s1678_s10 = scalar_select %p1357_p11, 1, 0 }
  0x14   : > { %s1679_s11 = scalar_select %p1361_p12, 1, 0 }
  0x15   : > { %s1370_s17 = scalar_lea.hbm %s1668_s0, %s1042_s13  ;;  %s220_s18 = scalar_lea.vmem [#allocation3], %s1022_s14 }
  0x16   : > { %s227_s19 = sshll.u32 %s220_s18, 4  ;;  %p1374_p13 = pnand %p1077_p10, %p1346_p5  ;;  %s1378_s19 = int_to_ptr.vmem [resolvable:$true] %s227_s19 }
  0x17   : > { %s1380_s21 = scalar_lea.sflag [#allocation4], %s216_s12  ;;  %s1166_s22 = scalar_lea.hbm %s1370_s17, 1024 }
  0x18   : > { %p1167_p0 = scmp.ne.s32.totalorder %s1370_s17, %s1166_s22  ;;  %p1168_p1 = pneg %p1374_p13 }
  0x19   : > { %s1171_s30 = scalar_lea.hbm %s1668_s0, 2048  ;;  %p1172_p4 = scmp.lt.u32.totalorder %s1370_s17, %s1668_s0 }
  0x1a   : > { %p1169_p2 = pnand %p1168_p1, %p1167_p0  ;;  %p1173_p5 = scmp.lt.u32.totalorder %s1171_s30, %s1166_s22 }
  0x1b   : > { %p1175_p8 = scmp.lt.u32.totalorder %s1166_s22, %s1370_s17 }
  0x1c   : > { %p1170_p3 = pneg %p1169_p2  ;;  %p1174_p7 = por %p1173_p5, %p1172_p4 }
  0x1e   : > { %p1176_p10 = por %p1175_p8, %p1174_p7 }
  0x20   : > { %p1177_p9 = pnand %p1176_p10, %p1170_p3 }
  0x22   : > { %1180 = shalt.err (!%p1177_p9)
}
  0x23   : > { %s1181_s12 = scalar_lea.vmem %s1378_s19, 1024  ;;  %s1264_s14 = smov [#allocation3]  }
  0x24   : > { %p1182_p0 = scmp.ne.s32.totalorder %s1378_s19, %s1181_s12  ;;  %s1186_s15 = sshll.u32 %s1264_s14, 4  ;;  %s1187_s15 = int_to_ptr.vmem [resolvable:$false] %s1186_s15 }
  0x25   : > { %s1188_s16 = scalar_lea.vmem %s1187_s15, 2048  ;;  %p1189_p11 = scmp.lt.s32.totalorder %s1378_s19, %s1187_s15 }
  0x26   : > { %p1184_p2 = pnand %p1182_p0, %p1168_p1  ;;  %p1190_p4 = scmp.lt.s32.totalorder %s1188_s16, %s1181_s12 }
  0x28   : > { %p1185_p12 = pneg %p1184_p2  ;;  %p1191_p5 = por %p1190_p4, %p1189_p11 }
  0x2a   : > { %p1192_p7 = pnand %p1191_p5, %p1185_p12 }
  0x2c   : > { %1195 = shalt.err (!%p1192_p7)
}
  0x2d   : > { %s1265_s18 = smov 128   ;;  %s1266_s22 = smov 8  }
  0x2e   : > { %1072 = dma.hbm_to_vmem [thread:$0]  (!%p1374_p13), %s1370_s17, 1024, %s1378_s19, %s1380_s21, %s1265_s18, %s1265_s18, %s1266_s22  }
  0x2f   : > { %p1025_p9 = scmp.ge.s32.totalorder %s1262_s26, 1  ;;  %p242_p1 = scmp.lt.s32.totalorder %s1262_s26, 3 }
  0x31   : > { %p243_p3 = pnand %p1025_p9, %p242_p1 }
  0x32   : > { %s1411_s27 = sand.u32 (!%p243_p3), 1, %s1254_s24  }
  0x33   : > { %246 = sbr.rel (%p243_p3) target bundleno = 1123 (0x463), region = 44  ;;  %s1026_s29 = sshll.u32 (!%p243_p3), %s1411_s27, 6 }
  0x34   : > { %s249_s30 = scalar_lea.sflag (!%p243_p3), [#allocation4], %s1411_s27  ;;  %s252_s8 = scalar_lea.vmem (!%p243_p3), [#allocation3], %s1026_s29 }
  0x3a   : > { %1241 = dma.done.wait (%p1350_p6), %s249_s30, 1024  }
  0x3b   : > { %1243 = vsyncadd (%p1350_p6), %s249_s30, 4294966272  ;;  %v1116_v1 = vld [vmem:[%s1670_s2] sm:$0xff]   ;;  %v1117_v2 = vld [vmem:[%s1670_s2 + $0x8] sm:$0xff]   ;;  %vm326_vm0 = vcmask 261120   ;;  %v1267_v15 = vmov 0   ;;  %p286_p6 = scmp.lt.s32.totalorder %s1328_s5, 1  ;;  %v478_v58 = vlaneseq }
  0x3c   : > { %1049 = vmatprep.subr.bf16.mxu0 %v1116_v1  ;;  %1061 = vmatprep.subr.bf16.mxu1 %v1116_v1  ;;  %v1425_v3 = vld [vmem:[%s252_s8] sm:$0xff]  ;;  %v1427_v4 = vld [vmem:[%s252_s8 + $0x8] sm:$0xff]  ;;  %v1435_v8 = vld [vmem:[%s252_s8 + $0x10] sm:$0xff]  ;;  %vm512_vm1 = vcmask 1041409   ;;  %vm514_vm2 = vcmask 1042434   ;;  %vm516_vm3 = vcmask 1043459  }
  0x3d   : > { %v1429_v5 = vld [vmem:[%s252_s8 + $0x20] sm:$0xff]  ;;  %1050 = vmatpush3.bf16.msra.mxu0 %v1116_v1  ;;  %1063 = vmatpush3.bf16.msra.mxu1 %v1116_v1  ;;  %v299_v6 = vpack.c.bf16 %v1427_v4, %v1425_v3  ;;  %v1433_v7 = vld [vmem:[%s252_s8 + $0x28] sm:$0xff]  ;;  %v1437_v9 = vld [vmem:[%s252_s8 + $0x18] sm:$0xff]  ;;  %s287_s15 = scalar_select %p286_p6, %s1328_s5, 1  ;;  %v1469_v59 = vshrl.u32 %v478_v58, 7  ;;  %vm518_vm4 = vcmask 1044484  }
  0x3e   : > { %1051 = vmatprep.subr.bf16.mxu0 %v1117_v2  ;;  %1062 = vmatprep.subr.bf16.mxu1 %v1117_v2  ;;  %v301_v10 = vpack.c.bf16 %v1433_v7, %v1429_v5  ;;  %v1441_v11 = vld [vmem:[%s252_s8 + $0x30] sm:$0xff]  ;;  %v1443_v12 = vld [vmem:[%s252_s8 + $0x38] sm:$0xff]  ;;  %v300_v13 = vpack.c.bf16 %v1437_v9, %v1435_v8  ;;  %vm520_vm5 = vcmask 1045509   ;;  %vm522_vm6 = vcmask 1046534   ;;  %s1027_s30 = sshll.u32 %s1411_s27, 3  ;;  %s1039_s8 = sshll.u32 %s1328_s5, 7 }
  0x3f   : > { %1053 = vmatprep.mubr.msk.bf16.mxu0 %vm326_vm0, %v299_v6  ;;  %v302_v14 = vpack.c.bf16 %v1443_v12, %v1441_v11  ;;  %1114 = vset.pattern.permute.xlu0 %v1267_v15  ;;  %v1029_v16 = vld [vmem:[%s1671_s3] ss:$0 sm:$0xff]  ;;  %s1028_s16 = sshll.u32 %s287_s15, 3  ;;  %v1475_v60 = vsub.s32 0, %v1469_v59  ;;  %v1482_v63 = vsub.s32 1, %v1469_v59  ;;  %v1487_v1 = vsub.s32 2, %v1469_v59  ;;  %s1622_s9 = scalar_lea.hbm %s1674_s6, %s1039_s8 }
  0x40   : > { %1057 = vmatprep.mubr.msk.bf16.mxu1 %vm326_vm0, %v301_v10  ;;  %1115 = vset.pattern.permute.xlu1 %v1267_v15  ;;  %v1036_v33 = vld [vmem:[%s1672_s4] ss:$0 sm:$0xff]  ;;  %s289_s29 = scalar_lea.vmem %s1669_s1, %s1028_s16  ;;  %v1492_v10 = vsub.s32 3, %v1469_v59  ;;  %vm524_vm7 = vcmask 1047559   ;;  %vm527_vm8 = vcmask 64512   ;;  %s284_s20 = scalar_lea.vmem [#allocation6], %s1027_s30 }
  0x41   : > { %1052 = vmatpush3.bf16.msra.mxu0 %v1117_v2  ;;  %1064 = vmatpush3.bf16.msra.mxu1 %v1117_v2  ;;  %v1477_v61 = vld [vmem:[%s289_s29] sm:$0xff]  ;;  %s937_s17 = sshll.u32 %s284_s20, 4  ;;  %s924_s5 = scalar_lea.sflag [#allocation5], %s1411_s27  ;;  %s1624_s17 = int_to_ptr.vmem [resolvable:$true] %s937_s17 }
  0x42   : > { %v600_v62 = vrot.slane %v1477_v61, %v1475_v60  ;;  %v607_v0 = vrot.slane %v1477_v61, %v1482_v63  ;;  %v1037_v2 = vld [vmem:[#allocation2] ss:$0 sm:$0xff]  ;;  %v614_v6 = vrot.slane %v1477_v61, %v1487_v1  ;;  %s1196_s13 = scalar_lea.vmem %s1624_s17, 128  ;;  %p1681_p12 = scmp.ne.s32.totalorder %s1678_s10, 0 }
  0x43   : > { %p1197_p11 = scmp.ne.s32.totalorder %s1624_s17, %s1196_s13  ;;  %s1268_s12 = smov [#allocation6]  }
  0x44   : > { %1054 = vmatmul.mubr.msk.bf16.vlgmr.msra.gmra.mrb[0].mxu0 %vm326_vm0, %v300_v13  ;;  %1058 = vmatmul.mubr.msk.bf16.vlgmr.msra.gmra.mrb[0].mxu1 %vm326_vm0, %v302_v14  ;;  %v621_v13 = vrot.slane %v1477_v61, %v1492_v10  ;;  %v1497_v14 = vsub.s32 4, %v1469_v59  ;;  %s1200_s14 = sshll.u32 %s1268_s12, 4  ;;  %s1201_s14 = int_to_ptr.vmem [resolvable:$false] %s1200_s14 }
  0x45   : > { %p1198_p13 = pnand %p1197_p11, %p1681_p12  ;;  %s1202_s15 = scalar_lea.vmem %s1201_s14, 256 }
  0x46   : > { %v628_v15 = vrot.slane %v1477_v61, %v1497_v14  ;;  %p1203_p10 = scmp.lt.s32.totalorder %s1624_s17, %s1201_s14  ;;  %p1204_p0 = scmp.lt.s32.totalorder %s1202_s15, %s1196_s13 }
  0x47   : > { %p1199_p8 = pneg %p1198_p13 }
  0x48   : > { %p1205_p2 = por %p1204_p0, %p1203_p10 }
  0x4a   : > { %p1206_p4 = pnand %p1205_p2, %p1199_p8 }
 0x117   : > { %v1055_v17 = vpop.f32.mrb[0].mxu0  ;;  %v1059_v18 = vpop.f32.mrb[0].mxu1 }
 0x118   : > { %v382_v19 = vadd.f32 %v1055_v17, %v1029_v16  ;;  %v398_v20 = vadd.f32 %v1059_v18, %v1029_v16  ;;  %v373_v21 = vpop.f32.mrb[1].mxu0  ;;  %v389_v22 = vpop.f32.mrb[1].mxu1  ;;  %v1507_v18 = vsub.s32 7, %v1469_v59 }
 0x119   : > { %v374_v23 = vadd.f32 %v1029_v16, %v373_v21  ;;  %v1056_v24 = vpop.f32.mrb[2].mxu0  ;;  %v1060_v25 = vpop.f32.mrb[2].mxu1  ;;  %v390_v29 = vadd.f32 %v1029_v16, %v389_v22 }
 0x11a   : > { %1118 = vtanh.f32 %v382_v19  ;;  %v385_v26 = vadd.f32 %v1056_v24, %v1029_v16  ;;  %v376_v27 = vpop.f32.mrb[3].mxu0  ;;  %v392_v28 = vpop.f32.mrb[3].mxu1  ;;  %v401_v31 = vadd.f32 %v1060_v25, %v1029_v16  ;;  %v649_v19 = vrot.slane %v1477_v61, %v1507_v18 }
 0x11b   : > { %1120 = vtanh.f32 %v398_v20  ;;  %v393_v30 = vadd.f32 %v1029_v16, %v392_v28  ;;  %v377_v32 = vadd.f32 %v1029_v16, %v376_v27  ;;  %v1502_v16 = vsub.s32 5, %v1469_v59 }
 0x11c   : > { %1122 = vtanh.f32 %v374_v23  ;;  %v479_v25 = vand.u32 127, %v478_v58 }
 0x11d   : > { %1124 = vtanh.f32 %v385_v26  ;;  %v635_v17 = vrot.slane %v1477_v61, %v1502_v16 }
 0x11e   : > { %1126 = vtanh.f32 %v390_v29  ;;  %v1512_v28 = vsub.s32 %v479_v25, %v1469_v59 }
 0x11f   : > { %1128 = vtanh.f32 %v393_v30 }
 0x120   : > { %1130 = vtanh.f32 %v401_v31 }
 0x121   : > { %1132 = vtanh.f32 %v377_v32 }
 0x124   : > { %v1119_v34 = vpop.eup %1118 }
 0x125   : > { %v1121_v35 = vpop.eup %1120  ;;  %v421_v36 = vmul.f32 %v1119_v34, %v1036_v33 }
 0x126   : > { %v1123_v37 = vpop.eup %1122  ;;  %v425_v38 = vmul.f32 %v1121_v35, %v1036_v33 }
 0x127   : > { %v433_v39 = vsel %vm326_vm0, %v421_v36, 0.0  ;;  %v419_v40 = vmul.f32 %v1123_v37, %v1036_v33  ;;  %v1125_v41 = vpop.eup %1124 }
 0x128   : > { %v445_v42 = vsel %vm326_vm0, %v425_v38, 0.0  ;;  %434 = vadd.xlane.f32.xlu1 %v433_v39  ;;  %v1127_v43 = vpop.eup %1126  ;;  %v422_v44 = vmul.f32 %v1125_v41, %v1036_v33 }
 0x129   : > { %446 = vadd.xlane.f32.xlu0 %v445_v42  ;;  %v427_v45 = vsel %vm326_vm0, %v419_v40, 0.0  ;;  %v1129_v46 = vpop.eup %1128  ;;  %v423_v50 = vmul.f32 %v1127_v43, %v1036_v33 }
 0x12a   : > { %v436_v47 = vsel %vm326_vm0, %v422_v44, 0.0  ;;  %v1131_v48 = vpop.eup %1130  ;;  %v424_v49 = vmul.f32 %v1129_v46, %v1036_v33 }
 0x12b   : > { %v1133_v51 = vpop.eup %1132  ;;  %v426_v53 = vmul.f32 %v1131_v48, %v1036_v33  ;;  %v439_v54 = vsel %vm326_vm0, %v423_v50, 0.0 }
 0x12c   : > { %437 = vadd.xlane.f32.xlu1 %v436_v47  ;;  %v442_v52 = vsel %vm326_vm0, %v424_v49, 0.0  ;;  %v420_v55 = vmul.f32 %v1133_v51, %v1036_v33 }
 0x12d   : > { %428 = vadd.xlane.f32.xlu0 %v427_v45  ;;  %v448_v56 = vsel %vm326_vm0, %v426_v53, 0.0 }
 0x12e   : > { %v430_v57 = vsel %vm326_vm0, %v420_v55, 0.0  ;;  %v1531_v55 = vsub.s32 6, %v1469_v59 }
 0x130   : > { %443 = vadd.xlane.f32.xlu1 %v442_v52 }
 0x131   : > { %440 = vadd.xlane.f32.xlu0 %v439_v54 }
 0x134   : > { %449 = vadd.xlane.f32.xlu1 %v448_v56  ;;  %v642_v56 = vrot.slane %v1477_v61, %v1531_v55 }
 0x135   : > { %431 = vadd.xlane.f32.xlu0 %v430_v57 }
 0x145   : > { %602 = vbcast.lane.b32.xlu1 %v600_v62, 256 }
 0x149   : > { %609 = vbcast.lane.b32.xlu1 %v607_v0, 256 }
 0x14b   : > { %458 = vperm.xlu0 %1114, %v1037_v2  }
 0x14d   : > { %616 = vbcast.lane.b32.xlu1 %v614_v6, 256 }
 0x14f   : > { %651 = vbcast.lane.b32.xlu0 %v649_v19, 256 }
 0x151   : > { %623 = vbcast.lane.b32.xlu1 %v621_v13, 256 }
 0x155   : > { %630 = vbcast.lane.b32.xlu1 %v628_v15, 256 }
 0x159   : > { %637 = vbcast.lane.b32.xlu1 %v635_v17, 256 }
 0x1b5   : > { %v435_v22 = vpop.xlane.xlu1 %434 }
 0x1b6   : > { %v447_v20 = vpop.xlane.xlu0 %446 }
 0x1b9   : > { %v438_v24 = vpop.xlane.xlu1 %437 }
 0x1ba   : > { %v429_v21 = vpop.xlane.xlu0 %428 }
 0x1bd   : > { %v444_v27 = vpop.xlane.xlu1 %443 }
 0x1be   : > { %v441_v23 = vpop.xlane.xlu0 %440 }
 0x1c1   : > { %v450_v39 = vpop.xlane.xlu1 %449 }
 0x1c2   : > { %v432_v26 = vpop.xlane.xlu0 %431 }
 0x1c5   : > { %v603_v57 = vpop.permute.xlu1 %602 }
 0x1c9   : > { %v610_v58 = vpop.permute.xlu1 %609 }
 0x1ca   : > { %v459_v29 = vpop.permute.xlu0 %458 }
 0x1cb   : > { %v461_v30 = vadd.f32 %v459_v29, %v429_v21  ;;  %v462_v31 = vadd.f32 %v459_v29, %v432_v26  ;;  %v463_v32 = vadd.f32 %v459_v29, %v435_v22  ;;  %v464_v33 = vadd.f32 %v459_v29, %v438_v24 }
 0x1cc   : > { %v465_v34 = vadd.f32 %v459_v29, %v441_v23  ;;  %v466_v35 = vadd.f32 %v459_v29, %v444_v27  ;;  %v467_v40 = vadd.f32 %v459_v29, %v447_v20  ;;  %v468_v41 = vadd.f32 %v459_v29, %v450_v39 }
 0x1cd   : > { %v483_v36 = vrot.slane %v461_v30, %v1512_v28  ;;  %v487_v37 = vrot.slane %v462_v31, %v1512_v28  ;;  %v491_v38 = vrot.slane %v463_v32, %v1512_v28  ;;  %v495_v42 = vrot.slane %v464_v33, %v1512_v28  ;;  %v617_v62 = vpop.permute.xlu1 %616 }
 0x1ce   : > { %v499_v44 = vrot.slane %v465_v34, %v1512_v28  ;;  %v503_v46 = vrot.slane %v466_v35, %v1512_v28  ;;  %v507_v48 = vrot.slane %v467_v40, %v1512_v28  ;;  %v511_v50 = vrot.slane %v468_v41, %v1512_v28 }
 0x1cf   : > { %v513_v43 = vsel %vm512_vm1, %v487_v37, %v483_v36 }
 0x1d0   : > { %v515_v45 = vsel %vm514_vm2, %v491_v38, %v513_v43 }
 0x1d1   : > { %v517_v47 = vsel %vm516_vm3, %v495_v42, %v515_v45  ;;  %v624_v0 = vpop.permute.xlu1 %623 }
 0x1d2   : > { %v519_v49 = vsel %vm518_vm4, %v499_v44, %v517_v47 }
 0x1d3   : > { %v521_v51 = vsel %vm520_vm5, %v503_v46, %v519_v49 }
 0x1d4   : > { %v523_v52 = vsel %vm522_vm6, %v507_v48, %v521_v51 }
 0x1d5   : > { %v525_v53 = vsel %vm524_vm7, %v511_v50, %v523_v52  ;;  %v631_v2 = vpop.permute.xlu1 %630  ;;  %v652_v52 = vpop.permute.xlu0 %651 }
 0x1d6   : > { %v528_v54 = vsel %vm527_vm8, %v525_v53, -inf }
 0x1d7   : > { %529 = vmax.xlane.f32.xlu1 %v528_v54 }
 0x1d9   : > { %v638_v6 = vpop.permute.xlu1 %637 }
 0x1e8   : > { %644 = vbcast.lane.b32.xlu1 %v642_v56, 256 }
 0x264   : > { %v530_v13 = vpop.xlane.xlu1 %529 }
 0x265   : > { %v539_v15 = vrot.slane %v530_v13, %v1482_v63  ;;  %v535_v17 = vrot.slane %v530_v13, %v1475_v60  ;;  %v547_v19 = vrot.slane %v530_v13, %v1492_v10  ;;  %v543_v59 = vrot.slane %v530_v13, %v1487_v1 }
 0x266   : > { %v555_v61 = vrot.slane %v530_v13, %v1502_v16  ;;  %v551_v24 = vrot.slane %v530_v13, %v1497_v14  ;;  %v563_v27 = vrot.slane %v530_v13, %v1507_v18  ;;  %v559_v37 = vrot.slane %v530_v13, %v1531_v55 }
 0x267   : > { %v573_v20 = vsub.f32 %v462_v31, %v539_v15  ;;  %v572_v21 = vsub.f32 %v461_v30, %v535_v17  ;;  %v575_v22 = vsub.f32 %v464_v33, %v547_v19  ;;  %v574_v23 = vsub.f32 %v463_v32, %v543_v59 }
 0x268   : > { %v577_v36 = vsub.f32 %v466_v35, %v555_v61  ;;  %v576_v39 = vsub.f32 %v465_v34, %v551_v24  ;;  %v579_v31 = vsub.f32 %v468_v41, %v563_v27  ;;  %v578_v42 = vsub.f32 %v467_v40, %v559_v37  ;;  %v645_v56 = vpop.permute.xlu1 %644 }
 0x269   : > { %v582_v25 = vmul.f32 1.442695, %v573_v20  ;;  %v580_v26 = vmul.f32 1.442695, %v572_v21  ;;  %v586_v29 = vmul.f32 1.442695, %v575_v22 }
 0x26a   : > { %v584_v38 = vmul.f32 1.442695, %v574_v23  ;;  %v590_v30 = vmul.f32 1.442695, %v577_v36  ;;  %v588_v32 = vmul.f32 1.442695, %v576_v39 }
 0x26b   : > { %1134 = vpow2.f32 %v582_v25  ;;  %v594_v33 = vmul.f32 1.442695, %v579_v31  ;;  %v592_v43 = vmul.f32 1.442695, %v578_v42 }
 0x26c   : > { %1136 = vpow2.f32 %v580_v26 }
 0x26d   : > { %1138 = vpow2.f32 %v586_v29 }
 0x26e   : > { %1140 = vpow2.f32 %v584_v38 }
 0x26f   : > { %1142 = vpow2.f32 %v590_v30 }
 0x270   : > { %1144 = vpow2.f32 %v588_v32 }
 0x271   : > { %1146 = vpow2.f32 %v594_v33 }
 0x272   : > { %1148 = vpow2.f32 %v592_v43 }
 0x275   : > { %v1135_v44 = vpop.eup %1134 }
 0x276   : > { %v1137_v45 = vpop.eup %1136  ;;  %v1543_v35 = vmul.f32 %v1135_v44, %v610_v58 }
 0x277   : > { %v1139_v46 = vpop.eup %1138  ;;  %v661_v34 = vmul.f32 %v1137_v45, %v603_v57 }
 0x278   : > { %v1141_v47 = vpop.eup %1140  ;;  %681 = vperm.xlu0 %1114, %v1543_v35   ;;  %v1546_v41 = vmul.f32 %v1139_v46, %v624_v0 }
 0x279   : > { %678 = vperm.xlu1 %1115, %v661_v34   ;;  %v1143_v40 = vpop.eup %1142  ;;  %v1548_v48 = vmul.f32 %v1141_v47, %v617_v62 }
 0x27a   : > { %v1145_v49 = vpop.eup %1144  ;;  %v1552_v50 = vmul.f32 %v1143_v40, %v638_v6 }
 0x27b   : > { %v1147_v51 = vpop.eup %1146  ;;  %v1554_v53 = vmul.f32 %v1145_v49, %v631_v2 }
 0x27c   : > { %687 = vperm.xlu0 %1114, %v1546_v41   ;;  %v1149_v54 = vpop.eup %1148  ;;  %v1558_v57 = vmul.f32 %v1147_v51, %v652_v52 }
 0x27d   : > { %684 = vperm.xlu1 %1115, %v1548_v48   ;;  %v1560_v58 = vmul.f32 %v1149_v54, %v645_v56 }
 0x280   : > { %693 = vperm.xlu0 %1114, %v1552_v50  }
 0x281   : > { %690 = vperm.xlu1 %1115, %v1554_v53  }
 0x284   : > { %699 = vperm.xlu0 %1114, %v1558_v57  }
 0x285   : > { %696 = vperm.xlu1 %1115, %v1560_v58  }
 0x2f7   : > { %v682_v62 = vpop.permute.xlu0 %681 }
 0x2f8   : > { %v679_v0 = vpop.permute.xlu1 %678  ;;  %v708_v2 = vrot.slane %v682_v62, %v1512_v28 }
 0x2f9   : > { %v704_v6 = vrot.slane %v679_v0, %v1512_v28 }
 0x2fb   : > { %v688_v13 = vpop.permute.xlu0 %687  ;;  %v733_v19 = vsel %vm512_vm1, %v708_v2, %v704_v6 }
 0x2fc   : > { %v685_v15 = vpop.permute.xlu1 %684  ;;  %v716_v59 = vrot.slane %v688_v13, %v1512_v28 }
 0x2fd   : > { %v712_v17 = vrot.slane %v685_v15, %v1512_v28 }
 0x2ff   : > { %v734_v20 = vsel %vm514_vm2, %v712_v17, %v733_v19  ;;  %v694_v21 = vpop.permute.xlu0 %693 }
 0x300   : > { %v691_v61 = vpop.permute.xlu1 %690  ;;  %v735_v23 = vsel %vm516_vm3, %v716_v59, %v734_v20  ;;  %v724_v24 = vrot.slane %v694_v21, %v1512_v28 }
 0x301   : > { %v720_v22 = vrot.slane %v691_v61, %v1512_v28 }
 0x303   : > { %v736_v25 = vsel %vm518_vm4, %v720_v22, %v735_v23  ;;  %v700_v26 = vpop.permute.xlu0 %699 }
 0x304   : > { %v697_v27 = vpop.permute.xlu1 %696  ;;  %v732_v29 = vrot.slane %v700_v26, %v1512_v28  ;;  %v737_v37 = vsel %vm520_vm5, %v724_v24, %v736_v25 }
 0x305   : > { %v728_v36 = vrot.slane %v697_v27, %v1512_v28 }
 0x307   : > { %v738_v38 = vsel %vm522_vm6, %v728_v36, %v737_v37 }
 0x308   : > { %v739_v39 = vsel %vm524_vm7, %v732_v29, %v738_v38 }
 0x309   : > { %v741_v31 = vsel %vm527_vm8, %v739_v39, 0.0 }
 0x30a   : > { %742 = vadd.xlane.f32.xlu1 %v741_v31 }
 0x397   : > { %v743_v30 = vpop.xlane.xlu1 %742 }
 0x398   : > { %v744_v42 = vmax.f32 %v743_v30, 1e-30 }
 0x39a   : > { %v749_v32 = vrot.slane %v744_v42, %v1475_v60  ;;  %v753_v33 = vrot.slane %v744_v42, %v1482_v63  ;;  %v757_v43 = vrot.slane %v744_v42, %v1487_v1  ;;  %v761_v28 = vrot.slane %v744_v42, %v1492_v10 }
 0x39b   : > { %v765_v45 = vrot.slane %v744_v42, %v1497_v14  ;;  %v769_v40 = vrot.slane %v744_v42, %v1502_v16  ;;  %v773_v1 = vrot.slane %v744_v42, %v1531_v55  ;;  %v777_v14 = vrot.slane %v744_v42, %v1507_v18 }
 0x39c   : > { %1150 = vrcp.f32 %v749_v32 }
 0x39d   : > { %1152 = vrcp.f32 %v753_v33 }
 0x39e   : > { %1154 = vrcp.f32 %v757_v43 }
 0x39f   : > { %1156 = vrcp.f32 %v761_v28 }
 0x3a0   : > { %1158 = vrcp.f32 %v765_v45 }
 0x3a1   : > { %1160 = vrcp.f32 %v769_v40 }
 0x3a2   : > { %1162 = vrcp.f32 %v773_v1 }
 0x3a3   : > { %1164 = vrcp.f32 %v777_v14 }
 0x3a6   : > { %v1151_v44 = vpop.eup %1150 }
 0x3a7   : > { %v787_v46 = vmul.f32 %v1151_v44, %v661_v34  ;;  %v1153_v47 = vpop.eup %1152 }
 0x3a8   : > { %v789_v60 = vmul.f32 %v1153_v47, %v1543_v35  ;;  %v1155_v63 = vpop.eup %1154 }
 0x3a9   : > { %804 = vperm.xlu0 %1114, %v787_v46   ;;  %v791_v49 = vmul.f32 %v1155_v63, %v1548_v48  ;;  %v1157_v10 = vpop.eup %1156 }
 0x3aa   : > { %v793_v34 = vmul.f32 %v1157_v10, %v1546_v41  ;;  %v1159_v51 = vpop.eup %1158 }
 0x3ab   : > { %v795_v16 = vmul.f32 %v1159_v51, %v1554_v53  ;;  %v1161_v35 = vpop.eup %1160 }
 0x3ac   : > { %v797_v52 = vmul.f32 %v1161_v35, %v1552_v50  ;;  %v1163_v54 = vpop.eup %1162 }
 0x3ad   : > { %809 = vperm.xlu0 %1114, %v789_v60   ;;  %v799_v55 = vmul.f32 %v1163_v54, %v1560_v58  ;;  %v1165_v48 = vpop.eup %1164 }
 0x3ae   : > { %v801_v56 = vmul.f32 %v1165_v48, %v1558_v57 }
 0x3b1   : > { %814 = vperm.xlu0 %1114, %v791_v49  }
 0x3b5   : > { %819 = vperm.xlu0 %1114, %v793_v34  }
 0x3b9   : > { %824 = vperm.xlu0 %1114, %v795_v16  }
 0x3bd   : > { %829 = vperm.xlu0 %1114, %v797_v52  }
 0x3c1   : > { %834 = vperm.xlu0 %1114, %v799_v55  }
 0x3c5   : > { %839 = vperm.xlu0 %1114, %v801_v56  }
 0x428   : > { %v805_v18 = vpop.permute.xlu0 %804 }
 0x429   : > { %v842_v53 = vmul.f32 %v805_v18, %v1425_v3 }
 0x42b   : > { %v850_v58 = vsel %vm326_vm0, %v842_v53, 0.0 }
 0x42c   : > { %v810_v41 = vpop.permute.xlu0 %809  ;;  %v851_v59 = vrot.slane %v850_v58, 4 }
 0x42d   : > { %v843_v62 = vmul.f32 %v810_v41, %v1427_v4 }
 0x42e   : > { %v852_v22 = vadd.f32 %v851_v59, %v850_v58 }
 0x42f   : > { %v857_v50 = vsel %vm326_vm0, %v843_v62, 0.0 }
 0x430   : > { %v815_v0 = vpop.permute.xlu0 %814  ;;  %v858_v57 = vrot.slane %v857_v50, 4  ;;  %v853_v37 = vrot.slane %v852_v22, 2 }
 0x431   : > { %v844_v6 = vmul.f32 %v815_v0, %v1435_v8 }
 0x432   : > { %v859_v21 = vadd.f32 %v858_v57, %v857_v50  ;;  %v854_v28 = vadd.f32 %v853_v37, %v852_v22 }
 0x433   : > { %v864_v2 = vsel %vm326_vm0, %v844_v6, 0.0 }
 0x434   : > { %v820_v13 = vpop.permute.xlu0 %819  ;;  %v865_v17 = vrot.slane %v864_v2, 4  ;;  %v855_v10 = vrot.slane %v854_v28, 1 }
 0x435   : > { %v845_v15 = vmul.f32 %v820_v13, %v1437_v9  ;;  %v860_v9 = vrot.slane %v859_v21, 2 }
 0x436   : > { %v866_v8 = vadd.f32 %v865_v17, %v864_v2  ;;  %v856_v56 = vadd.f32 %v855_v10, %v854_v28 }
 0x437   : > { %v871_v19 = vsel %vm326_vm0, %v845_v15, 0.0  ;;  %v861_v42 = vadd.f32 %v860_v9, %v859_v21 }
 0x438   : > { %v872_v4 = vrot.slane %v871_v19, 4  ;;  %v825_v20 = vpop.permute.xlu0 %824  ;;  %v867_v29 = vrot.slane %v866_v8, 2 }
 0x439   : > { %v846_v3 = vmul.f32 %v825_v20, %v1429_v5  ;;  %v862_v60 = vrot.slane %v861_v42, 1 }
 0x43a   : > { %v873_v23 = vadd.f32 %v872_v4, %v871_v19  ;;  %v868_v33 = vadd.f32 %v867_v29, %v866_v8 }
 0x43b   : > { %v878_v61 = vsel %vm326_vm0, %v846_v3, 0.0  ;;  %v863_v35 = vadd.f32 %v862_v60, %v861_v42 }
 0x43c   : > { %v879_v24 = vrot.slane %v878_v61, 4  ;;  %v830_v25 = vpop.permute.xlu0 %829  ;;  %v874_v38 = vrot.slane %v873_v23, 2  ;;  %v869_v49 = vrot.slane %v868_v33, 1 }
 0x43d   : > { %v847_v26 = vmul.f32 %v830_v25, %v1433_v7  ;;  %v914_v0 = vsel %vm512_vm1, %v863_v35, %v856_v56 }
 0x43e   : > { %v880_v27 = vadd.f32 %v879_v24, %v878_v61  ;;  %v875_v44 = vadd.f32 %v874_v38, %v873_v23  ;;  %v870_v48 = vadd.f32 %v869_v49, %v868_v33 }
 0x43f   : > { %v885_v36 = vsel %vm326_vm0, %v847_v26, 0.0 }
 0x440   : > { %v886_v39 = vrot.slane %v885_v36, 4  ;;  %v835_v31 = vpop.permute.xlu0 %834  ;;  %v881_v5 = vrot.slane %v880_v27, 2  ;;  %v876_v14 = vrot.slane %v875_v44, 1  ;;  %v915_v50 = vsel %vm514_vm2, %v870_v48, %v914_v0 }
 0x441   : > { %v848_v30 = vmul.f32 %v835_v31, %v1441_v11 }
 0x442   : > { %v887_v32 = vadd.f32 %v886_v39, %v885_v36  ;;  %v882_v47 = vadd.f32 %v881_v5, %v880_v27 }
 0x443   : > { %v892_v43 = vsel %vm326_vm0, %v848_v30, 0.0 }
 0x444   : > { %v888_v7 = vrot.slane %v887_v32, 2  ;;  %v893_v45 = vrot.slane %v892_v43, 4  ;;  %v840_v46 = vpop.permute.xlu0 %839  ;;  %v883_v16 = vrot.slane %v882_v47, 1 }
 0x445   : > { %v849_v40 = vmul.f32 %v840_v46, %v1443_v12  ;;  %v877_v12 = vadd.f32 %v876_v14, %v875_v44 }
 0x446   : > { %v889_v63 = vadd.f32 %v888_v7, %v887_v32  ;;  %v894_v1 = vadd.f32 %v893_v45, %v892_v43  ;;  %v884_v62 = vadd.f32 %v883_v16, %v882_v47 }
 0x447   : > { %v899_v11 = vsel %vm326_vm0, %v849_v40, 0.0  ;;  %v916_v13 = vsel %vm516_vm3, %v877_v12, %v915_v50 }
 0x448   : > { %v895_v34 = vrot.slane %v894_v1, 2  ;;  %v900_v51 = vrot.slane %v899_v11, 4  ;;  %v890_v52 = vrot.slane %v889_v63, 1  ;;  %v917_v15 = vsel %vm518_vm4, %v884_v62, %v916_v13 }
 0x44a   : > { %v896_v54 = vadd.f32 %v895_v34, %v894_v1  ;;  %v901_v55 = vadd.f32 %v900_v51, %v899_v11  ;;  %v891_v53 = vadd.f32 %v890_v52, %v889_v63 }
 0x44c   : > { %v897_v18 = vrot.slane %v896_v54, 1  ;;  %v902_v41 = vrot.slane %v901_v55, 2  ;;  %v918_v57 = vsel %vm520_vm5, %v891_v53, %v917_v15 }
 0x44e   : > { %v903_v6 = vadd.f32 %v902_v41, %v901_v55  ;;  %v898_v2 = vadd.f32 %v897_v18, %v896_v54 }
 0x450   : > { %v904_v58 = vrot.slane %v903_v6, 1  ;;  %v919_v19 = vsel %vm522_vm6, %v898_v2, %v918_v57 }
 0x452   : > { %v905_v17 = vadd.f32 %v904_v58, %v903_v6 }
 0x454   : > { %v920_v59 = vsel %vm524_vm7, %v905_v17, %v919_v19 }
 0x455   : > { %922 = vst.msk [vmem:[%s284_s20] sm:$0xff] %vm326_vm0, %v920_v59 }
 0x456   : > { %1209 = shalt.err (!%p1206_p4)
}
 0x457   : > { %s1210_s27 = scalar_lea.hbm %s1622_s9, 128  ;;  %s1214_s22 = scalar_lea.hbm %s1674_s6, 256 }
 0x458   : > { %p1211_p5 = scmp.ne.s32.totalorder %s1622_s9, %s1210_s27  ;;  %p1215_p1 = scmp.lt.u32.totalorder %s1622_s9, %s1674_s6 }
 0x459   : > { %p1216_p3 = scmp.lt.u32.totalorder %s1214_s22, %s1210_s27  ;;  %p1218_p11 = scmp.lt.u32.totalorder %s1210_s27, %s1622_s9 }
 0x45a   : > { %p1212_p7 = pnand %p1211_p5, %p1681_p12 }
 0x45b   : > { %p1217_p6 = por %p1216_p3, %p1215_p1 }
 0x45c   : > { %p1213_p9 = pneg %p1212_p7 }
 0x45d   : > { %p1219_p13 = por %p1218_p11, %p1217_p6 }
 0x45f   : > { %p1220_p8 = pnand %p1219_p13, %p1213_p9 }
 0x461   : > { %1223 = shalt.err (!%p1220_p8)
}
 0x462   : > { %1067 = dma.vmem_to_hbm [thread:$0]  (%p1681_p12), %s1624_s17, 128, %s1622_s9, %s924_s5  }
 0x463 PF: > { %s949_s8 = sand.u32 1, %s1250_s23   ;;  %p1682_p10 = scmp.ne.s32.totalorder %s1679_s11, 0 }
 0x464   : > { %p1683_p0 = scmp.ge.s32.totalorder %s1262_s26, 2  ;;  %s950_s20 = scalar_lea.sflag [#allocation5], %s949_s8 }
 0x466   : > { %p1074_p2 = pnand %p1683_p0, %p1682_p10 }
 0x468   : > { %1245 = dma.done.wait (!%p1074_p2), %s950_s20, 128  }
 0x469   : > { %1247 = vsyncadd (!%p1074_p2), %s950_s20, 4294967168  ;;  %p21_p4 = scmp.ge.s32.totalorder %s1332_s28, 4   ;;  %s1684_s23 = smov %s1254_s24 }
 0x46a   : > { %s1685_s24 = smov %s1258_s25  ;;  %s1686_s25 = smov %s1344_s7 }
 0x46b   : > { %s1687_s26 = smov %s1332_s28  ;;  %23 = sbr.rel (!%p21_p4) target bundleno = 8 (0x8), region = 92 }
 0x472   :  { %955 = vsyncpa [#allocation4], 1 }
 0x473   :  { %957 = vsyncpa [#allocation4 + $0x1], 1 }
 0x474   :  { %958 = vsyncpa [#allocation5], 1 }
 0x475   :  { %960 = vsyncpa [#allocation5 + $0x1], 1 }

</bundles_post_ra>
